<compile_context>
chip_gen: v7x
topology: tpu7x:2x2x1
jax: 0.10.0
libtpu: 0.0.40
codegen_flags: <defaults>
</compile_context>

<pallas_src>
from functools import partial

import jax
import jax.numpy as jnp
from jax import lax
from jax.experimental import pallas as pl
from jax.experimental.pallas import tpu as pltpu

BN_EPS = 1e-5


def _rup(x, m):
    return (x + m - 1) // m * m


def _mlp_bn_kernel(x_ref, w_ref, vec_ref, o_ref, *, input_size, hidden, num_classes):
    """MXU matmul (bf16 in, f32 acc) -> one-pass batch stats -> fused scale/shift + ReLU, x3."""
    inv_n = 1.0 / x_ref.shape[0]

    # Static sublane-aligned slices of the single weight slab (bf16).
    off2 = _rup(input_size, 16)          # bf16 sublane-pack alignment
    off3 = off2 + _rup(hidden, 16)
    w1t = w_ref[0:input_size, :hidden]
    w2t = w_ref[off2:off2 + hidden, :hidden]
    w3t = w_ref[off3:off3 + hidden, :num_classes]

    # Static row slices of the packed per-feature vector slab (f32).
    g1 = vec_ref[0:1, :hidden]
    beta1 = vec_ref[1:2, :hidden]
    g2 = vec_ref[2:3, :hidden]
    beta2 = vec_ref[3:4, :hidden]
    b3 = vec_ref[4:5, :num_classes]

    def bn_relu(h, g, beta):
        # One-pass batch statistics (two independent XLU reductions).
        s1 = jnp.sum(h, axis=0, keepdims=True)
        s2 = jnp.sum(h * h, axis=0, keepdims=True)
        mu = s1 * inv_n
        # Clamp: E[h^2] - mu^2 can go slightly negative from f32 cancellation.
        var = jnp.maximum(s2 * inv_n - mu * mu, 0.0)
        # Fold normalize + affine into one per-feature scale/shift on (1, H);
        # the full (B, H) tile only sees a fused multiply-add + max.
        scale = g * lax.rsqrt(var + BN_EPS)
        shift = beta - mu * scale
        return jnp.maximum(h * scale + shift, 0.0)

    # Layer-1/2 biases omitted: exactly cancelled by the batch-mean subtraction.
    h1 = bn_relu(
        jnp.dot(x_ref[...], w1t, preferred_element_type=jnp.float32), g1, beta1)
    h2 = bn_relu(
        jnp.dot(h1.astype(jnp.bfloat16), w2t, preferred_element_type=jnp.float32),
        g2, beta2)
    out = jnp.dot(h2.astype(jnp.bfloat16), w3t,
                  preferred_element_type=jnp.float32) + b3
    o_ref[...] = out.astype(o_ref.dtype)


def pack_params(params):
    """One-time parameter packing (NOT in the per-call hot path)."""
    (w1, b1, g1, beta1, w2, b2, g2, beta2, w3, b3) = params
    del b1, b2  # exact no-ops under training-mode batch-stat BatchNorm
    hidden, input_size = w1.shape
    num_classes = w3.shape[0]

    off2 = _rup(input_size, 16)
    off3 = off2 + _rup(hidden, 16)
    rows = off3 + _rup(hidden, 16)
    slab_w = max(hidden, num_classes)

    # Single bf16 weight slab, sublane-stacked (never lane-packed).
    wslab = jnp.zeros((rows, slab_w), jnp.float32)
    wslab = wslab.at[:input_size, :hidden].set(w1.T)
    wslab = wslab.at[off2:off2 + hidden, :hidden].set(w2.T)
    wslab = wslab.at[off3:off3 + hidden, :num_classes].set(w3.T)
    wslab = wslab.astype(jnp.bfloat16)

    # Single f32 slab for all per-feature vectors (one (8, F) tile anyway).
    vec = jnp.zeros((8, slab_w), jnp.float32)
    vec = vec.at[0, :hidden].set(g1)
    vec = vec.at[1, :hidden].set(beta1)
    vec = vec.at[2, :hidden].set(g2)
    vec = vec.at[3, :hidden].set(beta2)
    vec = vec.at[4, :num_classes].set(b3)

    return wslab, vec, input_size, hidden, num_classes


@partial(jax.jit, static_argnums=(3, 4, 5))
def _forward(x, wslab, vec, input_size, hidden, num_classes):
    kernel = partial(_mlp_bn_kernel, input_size=input_size, hidden=hidden,
                     num_classes=num_classes)
    vmem = pl.BlockSpec(memory_space=pltpu.MemorySpace.VMEM)
    return pl.pallas_call(
        kernel,
        out_shape=jax.ShapeDtypeStruct((x.shape[0], num_classes), jnp.float32),
        in_specs=[vmem, vmem, vmem],
        out_specs=vmem,
        compiler_params=pltpu.CompilerParams(
            # Explicit budget; current shapes use well under 1 MiB — safe on
            # every generation (v7x physical ceiling is 64 MiB).
            vmem_limit_bytes=32 * 1024 * 1024,
        ),
    )(x.astype(jnp.bfloat16), wslab, vec)


def neural_net_with_batchnorm(x, packed):
    wslab, vec, input_size, hidden, num_classes = packed
    return _forward(x, wslab, vec, input_size, hidden, num_classes)


def _init_params(key, input_size, hidden_size, num_classes):
    """Deterministic synthetic parameters mirroring the PyTorch module's shapes."""
    ks = jax.random.split(key, 6)

    def linear_init(kw, kb, fan_in, fan_out):
        bound = 1.0 / jnp.sqrt(fan_in)
        w = jax.random.uniform(kw, (fan_out, fan_in), jnp.float32, -bound, bound)
        b = jax.random.uniform(kb, (fan_out,), jnp.float32, -bound, bound)
        return w, b

    w1, b1 = linear_init(ks[0], ks[1], input_size, hidden_size)
    w2, b2 = linear_init(ks[2], ks[3], hidden_size, hidden_size)
    w3, b3 = linear_init(ks[4], ks[5], hidden_size, num_classes)
    g1 = jnp.ones((hidden_size,), jnp.float32)
    beta1 = jnp.zeros((hidden_size,), jnp.float32)
    g2 = jnp.ones((hidden_size,), jnp.float32)
    beta2 = jnp.zeros((hidden_size,), jnp.float32)
    return (w1, b1, g1, beta1, w2, b2, g2, beta2, w3, b3)


def _reference(x, params):
    """Pure-JAX f32 reference with the FULL original semantics (biases included)."""
    (w1, b1, g1, beta1, w2, b2, g2, beta2, w3, b3) = params

    def bn_relu(h, g, beta):
        mu = jnp.mean(h, axis=0, keepdims=True)
        var = jnp.mean((h - mu) ** 2, axis=0, keepdims=True)
        return jnp.maximum((h - mu) / jnp.sqrt(var + BN_EPS) * g + beta, 0.0)

    h = bn_relu(x @ w1.T + b1, g1, beta1)
    h = bn_relu(h @ w2.T + b2, g2, beta2)
    return h @ w3.T + b3


if __name__ == "__main__":
    key = jax.random.PRNGKey(0)
    k_x, k_p = jax.random.split(key)

    batch, input_size, hidden_size, num_classes = 8, 32, 32, 16
    x = jax.random.normal(k_x, (batch, input_size), jnp.float32)
    params = _init_params(k_p, input_size, hidden_size, num_classes)

    packed = pack_params(params)          # one-time packing, out of the hot path
    out = neural_net_with_batchnorm(x, packed)
    out = jax.block_until_ready(out)

    ref = _reference(x, params)
    assert out.shape == (batch, num_classes)
    assert bool(jnp.all(jnp.isfinite(out)))
    # bf16 MXU inputs vs f32 reference: ~1e-2 abs error budget after two BN layers.
    max_err = float(jnp.max(jnp.abs(out - ref)))
    assert jnp.allclose(out, ref, atol=5e-2, rtol=5e-2), f"max_err={max_err}"
    print("KERNEL_OK")
</pallas_src>

<mosaic_0001>
module attributes {stable_mosaic.version = 11 : i64} {
  func.func @_mlp_bn_kernel(%arg0: memref<8x32xbf16, #tpu.memory_space<vmem>>, %arg1: memref<96x32xbf16, #tpu.memory_space<vmem>>, %arg2: memref<8x32xf32, #tpu.memory_space<vmem>>, %arg3: memref<8x16xf32, #tpu.memory_space<vmem>>) attributes {dimension_semantics = [], scalar_prefetch = 0 : i64, scratch_operands = 0 : i64, tpu.core_type = #tpu.core_type<tc>} {
    %c0 = arith.constant 0 : index
    %c0_0 = arith.constant 0 : index
    %0 = vector.load %arg1[%c0, %c0_0] : memref<96x32xbf16, #tpu.memory_space<vmem>>, vector<32x32xbf16>
    %c32 = arith.constant 32 : index
    %c0_1 = arith.constant 0 : index
    %1 = vector.load %arg1[%c32, %c0_1] : memref<96x32xbf16, #tpu.memory_space<vmem>>, vector<32x32xbf16>
    %c64 = arith.constant 64 : index
    %c0_2 = arith.constant 0 : index
    %2 = vector.load %arg1[%c64, %c0_2] : memref<96x32xbf16, #tpu.memory_space<vmem>>, vector<32x16xbf16>
    %c0_3 = arith.constant 0 : index
    %c0_4 = arith.constant 0 : index
    %3 = vector.load %arg2[%c0_3, %c0_4] : memref<8x32xf32, #tpu.memory_space<vmem>>, vector<1x32xf32>
    %c1 = arith.constant 1 : index
    %c0_5 = arith.constant 0 : index
    %4 = vector.load %arg2[%c1, %c0_5] : memref<8x32xf32, #tpu.memory_space<vmem>>, vector<1x32xf32>
    %c2 = arith.constant 2 : index
    %c0_6 = arith.constant 0 : index
    %5 = vector.load %arg2[%c2, %c0_6] : memref<8x32xf32, #tpu.memory_space<vmem>>, vector<1x32xf32>
    %c3 = arith.constant 3 : index
    %c0_7 = arith.constant 0 : index
    %6 = vector.load %arg2[%c3, %c0_7] : memref<8x32xf32, #tpu.memory_space<vmem>>, vector<1x32xf32>
    %c4 = arith.constant 4 : index
    %c0_8 = arith.constant 0 : index
    %7 = vector.load %arg2[%c4, %c0_8] : memref<8x32xf32, #tpu.memory_space<vmem>>, vector<1x16xf32>
    %c0_9 = arith.constant 0 : index
    %c0_10 = arith.constant 0 : index
    %8 = vector.load %arg0[%c0_9, %c0_10] : memref<8x32xbf16, #tpu.memory_space<vmem>>, vector<8x32xbf16>
    %cst = arith.constant dense<0.000000e+00> : vector<8x32xf32>
    %9 = tpu.matmul %8, %0, %cst {dimension_numbers = #tpu.dot_dimension_numbers<[1], [0], [0], [1], [0, 0, 1, 1], [], []>} : vector<8x32xbf16>, vector<32x32xbf16>, vector<8x32xf32> -> vector<8x32xf32>
    %cst_11 = arith.constant dense<0.000000e+00> : vector<32xf32>
    %10 = vector.multi_reduction <add>, %9, %cst_11 [0] : vector<8x32xf32> to vector<32xf32>
    %11 = vector.shape_cast %10 : vector<32xf32> to vector<1x32xf32>
    %12 = arith.mulf %9, %9 : vector<8x32xf32>
    %cst_12 = arith.constant dense<0.000000e+00> : vector<32xf32>
    %13 = vector.multi_reduction <add>, %12, %cst_12 [0] : vector<8x32xf32> to vector<32xf32>
    %14 = vector.shape_cast %13 : vector<32xf32> to vector<1x32xf32>
    %cst_13 = arith.constant 1.250000e-01 : f32
    %15 = vector.broadcast %cst_13 : f32 to vector<1x32xf32>
    %16 = arith.mulf %11, %15 : vector<1x32xf32>
    %cst_14 = arith.constant 1.250000e-01 : f32
    %17 = vector.broadcast %cst_14 : f32 to vector<1x32xf32>
    %18 = arith.mulf %14, %17 : vector<1x32xf32>
    %19 = arith.mulf %16, %16 : vector<1x32xf32>
    %20 = arith.subf %18, %19 : vector<1x32xf32>
    %cst_15 = arith.constant 0.000000e+00 : f32
    %21 = vector.broadcast %cst_15 : f32 to vector<1x32xf32>
    %22 = arith.maximumf %20, %21 : vector<1x32xf32>
    %cst_16 = arith.constant 9.99999974E-6 : f32
    %23 = vector.broadcast %cst_16 : f32 to vector<1x32xf32>
    %24 = arith.addf %22, %23 : vector<1x32xf32>
    %25 = math.rsqrt %24 : vector<1x32xf32>
    %26 = arith.mulf %3, %25 : vector<1x32xf32>
    %27 = arith.mulf %16, %26 : vector<1x32xf32>
    %28 = arith.subf %4, %27 : vector<1x32xf32>
    %29 = vector.broadcast %26 : vector<1x32xf32> to vector<8x32xf32>
    %30 = arith.mulf %9, %29 : vector<8x32xf32>
    %31 = vector.broadcast %28 : vector<1x32xf32> to vector<8x32xf32>
    %32 = arith.addf %30, %31 : vector<8x32xf32>
    %cst_17 = arith.constant 0.000000e+00 : f32
    %33 = vector.broadcast %cst_17 : f32 to vector<8x32xf32>
    %34 = arith.maximumf %32, %33 : vector<8x32xf32>
    %35 = arith.truncf %34 : vector<8x32xf32> to vector<8x32xbf16>
    %cst_18 = arith.constant dense<0.000000e+00> : vector<8x32xf32>
    %36 = tpu.matmul %35, %1, %cst_18 {dimension_numbers = #tpu.dot_dimension_numbers<[1], [0], [0], [1], [0, 0, 1, 1], [], []>} : vector<8x32xbf16>, vector<32x32xbf16>, vector<8x32xf32> -> vector<8x32xf32>
    %cst_19 = arith.constant dense<0.000000e+00> : vector<32xf32>
    %37 = vector.multi_reduction <add>, %36, %cst_19 [0] : vector<8x32xf32> to vector<32xf32>
    %38 = vector.shape_cast %37 : vector<32xf32> to vector<1x32xf32>
    %39 = arith.mulf %36, %36 : vector<8x32xf32>
    %cst_20 = arith.constant dense<0.000000e+00> : vector<32xf32>
    %40 = vector.multi_reduction <add>, %39, %cst_20 [0] : vector<8x32xf32> to vector<32xf32>
    %41 = vector.shape_cast %40 : vector<32xf32> to vector<1x32xf32>
    %cst_21 = arith.constant 1.250000e-01 : f32
    %42 = vector.broadcast %cst_21 : f32 to vector<1x32xf32>
    %43 = arith.mulf %38, %42 : vector<1x32xf32>
    %cst_22 = arith.constant 1.250000e-01 : f32
    %44 = vector.broadcast %cst_22 : f32 to vector<1x32xf32>
    %45 = arith.mulf %41, %44 : vector<1x32xf32>
    %46 = arith.mulf %43, %43 : vector<1x32xf32>
    %47 = arith.subf %45, %46 : vector<1x32xf32>
    %cst_23 = arith.constant 0.000000e+00 : f32
    %48 = vector.broadcast %cst_23 : f32 to vector<1x32xf32>
    %49 = arith.maximumf %47, %48 : vector<1x32xf32>
    %cst_24 = arith.constant 9.99999974E-6 : f32
    %50 = vector.broadcast %cst_24 : f32 to vector<1x32xf32>
    %51 = arith.addf %49, %50 : vector<1x32xf32>
    %52 = math.rsqrt %51 : vector<1x32xf32>
    %53 = arith.mulf %5, %52 : vector<1x32xf32>
    %54 = arith.mulf %43, %53 : vector<1x32xf32>
    %55 = arith.subf %6, %54 : vector<1x32xf32>
    %56 = vector.broadcast %53 : vector<1x32xf32> to vector<8x32xf32>
    %57 = arith.mulf %36, %56 : vector<8x32xf32>
    %58 = vector.broadcast %55 : vector<1x32xf32> to vector<8x32xf32>
    %59 = arith.addf %57, %58 : vector<8x32xf32>
    %cst_25 = arith.constant 0.000000e+00 : f32
    %60 = vector.broadcast %cst_25 : f32 to vector<8x32xf32>
    %61 = arith.maximumf %59, %60 : vector<8x32xf32>
    %62 = arith.truncf %61 : vector<8x32xf32> to vector<8x32xbf16>
    %cst_26 = arith.constant dense<0.000000e+00> : vector<8x16xf32>
    %63 = tpu.matmul %62, %2, %cst_26 {dimension_numbers = #tpu.dot_dimension_numbers<[1], [0], [0], [1], [0, 0, 1, 1], [], []>} : vector<8x32xbf16>, vector<32x16xbf16>, vector<8x16xf32> -> vector<8x16xf32>
    %64 = vector.broadcast %7 : vector<1x16xf32> to vector<8x16xf32>
    %65 = arith.addf %63, %64 : vector<8x16xf32>
    %c0_27 = arith.constant 0 : index
    %c0_28 = arith.constant 0 : index
    %66 = vector.load %arg3[%c0_27, %c0_28] : memref<8x16xf32, #tpu.memory_space<vmem>>, vector<8x16xf32>
    tpu.vector_store %arg3[%c0_27, %c0_28], %65 {strides = array<i32>} : memref<8x16xf32, #tpu.memory_space<vmem>>, vector<8x16xf32>,
    return
  }
}

</mosaic_0001>

<bundles_post_ra>
// kernel: _forward.1
= control target key start
LH: loop header
LB: loop body
LE: loop exit
PB: predicated region body
PF: predicated region fallthrough
CT: control target
= control target key end

     0   :  { %v374_v1 = vmov 0.0   ;;  %vm375_vm0 = vmmov 0   ;;  %vm46_vm1 = vcmask 261120   ;;  %s461_s0 = inlined_call_operand.vmem [shape: bf16[8,32], index: 0, kind: input, shape index: {}]   ;;  %s462_s1 = inlined_call_operand.vmem [shape: bf16[96,32], index: 1, kind: input, shape index: {}]   ;;  %s463_s2 = inlined_call_operand.vmem [shape: f32[8,32], index: 2, kind: input, shape index: {}]   ;;  %s464_s3 = inlined_call_operand.hbm [shape: f32[8,16], index: 3, kind: output, shape index: {}]  }
   0x1   :  { %v340_v0 = vld [vmem:[%s462_s1] sm:$0xff]   ;;  %313 = vmatprep.subr.bf16.mxu0 %v374_v1  ;;  %321 = vmatprep.subr.bf16.mxu1 %v374_v1  ;;  %v341_v2 = vld [vmem:[%s462_s1 + $0x8] sm:$0xff]  }
   0x2   :  { %314 = vmatpush3.bf16.msra.mxu0 %v340_v0  ;;  %317 = vmatprep.mubr.msk.bf16.mxu0 %vm375_vm0, %v374_v1  ;;  %v33_v3 = vld [vmem:[%s461_s0] sm:$0xf] }
   0x3   :  { %315 = vmatprep.subr.bf16.mxu0 %v374_v1  ;;  %325 = vmatprep.mubr.msk.bf16.mxu1 %vm375_vm0, %v374_v1 }
   0x6   :  { %316 = vmatpush3.bf16.msra.mxu0 %v341_v2 }
   0x7   :  { %8 = vsyncpa [#allocation3], 0  ;;  %329 = vmatprep.subr.bf16.mxu0 %v374_v1  ;;  %v342_v4 = vld [vmem:[%s462_s1 + $0x10] sm:$0xff]   ;;  %v343_v5 = vld [vmem:[%s462_s1 + $0x18] sm:$0xff]   ;;  %v115_v31 = vlaneseq  ;;  %s376_s7 = smov [#allocation2]   ;;  %vm278_vm2 = vcmask 130048  }
   0x8   :  { %322 = vmatpush3.bf16.msra.mxu1 %v342_v4  ;;  %v28_v33 = vld [vmem:[%s463_s2] sm:$0x1]  ;;  %v29_v37 = vld [vmem:[%s463_s2 + $0x1] sm:$0x1]  ;;  %v345_v47 = vld [vmem:[%s462_s1 + $0x28] sm:$0xff]   ;;  %s286_s8 = sshll.u32 %s376_s7, 4  ;;  %s287_s8 = int_to_ptr.vmem [resolvable:$true] %s286_s8 }
   0x9   :  { %318 = vmatmul.mubr.msk.bf16.vlgmr.msra.gmra.mrb[0].mxu0 %vm46_vm1, %v33_v3  ;;  %323 = vmatprep.subr.bf16.mxu1 %v374_v1  ;;  %v116_v32 = vshrl.u32 %v115_v31, 7  ;;  %v344_v46 = vld [vmem:[%s462_s1 + $0x20] sm:$0xff]   ;;  %s350_s9 = scalar_lea.vmem %s287_s8, 128  ;;  %p355_p1 = scmp.lt.s32.totalorder %s287_s8, %s287_s8 }
   0xa   :  { %333 = vmatprep.mubr.msk.bf16.mxu0 %vm375_vm0, %v374_v1  ;;  %330 = vmatpush3.bf16.msra.mxu0 %v344_v46  ;;  %p351_p0 = scmp.ne.s32.totalorder %s287_s8, %s350_s9  ;;  %p356_p2 = scmp.lt.s32.totalorder %s350_s9, %s350_s9 }
   0xb   :  { %v117_v34 = vsub.s32 0, %v116_v32  ;;  %331 = vmatprep.subr.bf16.mxu0 %v374_v1 }
   0xc   :  { %324 = vmatpush3.bf16.msra.mxu1 %v343_v5  ;;  %p357_p3 = por %p356_p2, %p355_p1 }
   0xe   :  { %332 = vmatpush3.bf16.msra.mxu0 %v345_v47  ;;  %p358_p4 = pnand %p357_p3, %p351_p0 }
  0xdc   :  { %v84_v6 = vpop.f32.mrb[0].mxu0 }
  0xdd   :  { %v90_v7 = vsel %vm46_vm1, %v84_v6, 0.0  ;;  %v97_v8 = vmul.f32 %v84_v6, %v84_v6  ;;  %v319_v9 = vpop.f32.mrb[1].mxu0 }
  0xde   :  { %v91_v10 = vrot.slane %v90_v7, 4  ;;  %v87_v11 = vpop.f32.mrb[2].mxu0  ;;  %v30_v9 = vld [vmem:[%s463_s2 + $0x2] sm:$0x1] }
  0xdf   :  { %v98_v12 = vsel %vm46_vm1, %v97_v8, 0.0  ;;  %v320_v13 = vpop.f32.mrb[3].mxu0 }
  0xe0   :  { %v92_v14 = vadd.f32 %v91_v10, %v90_v7  ;;  %v99_v15 = vrot.slane %v98_v12, 4 }
  0xe2   :  { %v93_v16 = vrot.slane %v92_v14, 2  ;;  %v100_v17 = vadd.f32 %v99_v15, %v98_v12  ;;  %v31_v12 = vld [vmem:[%s463_s2 + $0x3] sm:$0x1] }
  0xe4   :  { %v94_v18 = vadd.f32 %v93_v16, %v92_v14  ;;  %v101_v19 = vrot.slane %v100_v17, 2 }
  0xe6   :  { %v95_v20 = vrot.slane %v94_v18, 1  ;;  %v102_v21 = vadd.f32 %v101_v19, %v100_v17 }
  0xe8   :  { %v96_v22 = vadd.f32 %v95_v20, %v94_v18  ;;  %v103_v23 = vrot.slane %v102_v21, 1 }
  0xea   :  { %v104_v24 = vadd.f32 %v103_v23, %v102_v21  ;;  %v105_v25 = vmul.f32 0.125, %v96_v22  ;;  %v300_v21 = vld [vmem:[%s463_s2 + $0x4] ss:$0 sm:$0xff] }
  0xec   :  { %v106_v26 = vmul.f32 0.125, %v104_v24  ;;  %v107_v27 = vmul.f32 %v105_v25, %v105_v25 }
  0xee   :  { %v108_v28 = vsub.f32 %v106_v26, %v107_v27 }
  0xf0   :  { %v109_v29 = vmax.f32 %v108_v28, 0.0 }
  0xf2   :  { %v110_v30 = vadd.f32 1e-05, %v109_v29 }
  0xf4   :  { %346 = vrsqrt.f32 %v110_v30 }
  0xfe   :  { %v347_v35 = vpop.eup %346 }
  0xff   :  { %v112_v36 = vmul.f32 %v347_v35, %v28_v33 }
 0x101   :  { %v113_v38 = vmul.f32 %v112_v36, %v105_v25  ;;  %v118_v39 = vrot.slane %v112_v36, %v117_v34 }
 0x103   :  { %v114_v40 = vsub.f32 %v29_v37, %v113_v38  ;;  %v119_v41 = vmul.f32 %v118_v39, %v84_v6 }
 0x105   :  { %v123_v42 = vrot.slane %v114_v40, %v117_v34 }
 0x107   :  { %v124_v43 = vadd.f32 %v123_v42, %v119_v41 }
 0x109   :  { %v125_v44 = vmax.f32 %v124_v43, 0.0 }
 0x10b   :  { %v126_v45 = vpack.c.bf16 %v125_v44, %v125_v44 }
 0x10d   :  { %326 = vmatmul.mubr.msk.bf16.vlgmr.msra.gmra.mrb[0].mxu1 %vm46_vm1, %v126_v45 }
 0x1e0   :  { %v176_v48 = vpop.f32.mrb[0].mxu1 }
 0x1e1   :  { %v182_v49 = vsel %vm46_vm1, %v176_v48, 0.0  ;;  %v189_v50 = vmul.f32 %v176_v48, %v176_v48  ;;  %v327_v51 = vpop.f32.mrb[1].mxu1 }
 0x1e2   :  { %v183_v52 = vrot.slane %v182_v49, 4  ;;  %v179_v53 = vpop.f32.mrb[2].mxu1 }
 0x1e3   :  { %v190_v54 = vsel %vm46_vm1, %v189_v50, 0.0  ;;  %v328_v55 = vpop.f32.mrb[3].mxu1 }
 0x1e4   :  { %v184_v56 = vadd.f32 %v183_v52, %v182_v49  ;;  %v191_v57 = vrot.slane %v190_v54, 4 }
 0x1e6   :  { %v185_v58 = vrot.slane %v184_v56, 2  ;;  %v192_v59 = vadd.f32 %v191_v57, %v190_v54 }
 0x1e8   :  { %v186_v60 = vadd.f32 %v185_v58, %v184_v56  ;;  %v193_v61 = vrot.slane %v192_v59, 2 }
 0x1ea   :  { %v187_v62 = vrot.slane %v186_v60, 1  ;;  %v194_v63 = vadd.f32 %v193_v61, %v192_v59 }
 0x1ec   :  { %v188_v0 = vadd.f32 %v187_v62, %v186_v60  ;;  %v195_v1 = vrot.slane %v194_v63, 1 }
 0x1ee   :  { %v196_v2 = vadd.f32 %v195_v1, %v194_v63  ;;  %v197_v3 = vmul.f32 0.125, %v188_v0 }
 0x1f0   :  { %v198_v4 = vmul.f32 0.125, %v196_v2  ;;  %v199_v5 = vmul.f32 %v197_v3, %v197_v3 }
 0x1f2   :  { %v200_v6 = vsub.f32 %v198_v4, %v199_v5 }
 0x1f4   :  { %v201_v7 = vmax.f32 %v200_v6, 0.0 }
 0x1f6   :  { %v202_v8 = vadd.f32 1e-05, %v201_v7 }
 0x1f8   :  { %348 = vrsqrt.f32 %v202_v8 }
 0x202   :  { %v349_v10 = vpop.eup %348 }
 0x203   :  { %v204_v11 = vmul.f32 %v349_v10, %v30_v9 }
 0x205   :  { %v205_v13 = vmul.f32 %v204_v11, %v197_v3  ;;  %v210_v14 = vrot.slane %v204_v11, %v117_v34 }
 0x207   :  { %v206_v15 = vsub.f32 %v31_v12, %v205_v13  ;;  %v211_v16 = vmul.f32 %v210_v14, %v176_v48 }
 0x209   :  { %v215_v17 = vrot.slane %v206_v15, %v117_v34 }
 0x20b   :  { %v216_v18 = vadd.f32 %v215_v17, %v211_v16 }
 0x20d   :  { %v217_v19 = vmax.f32 %v216_v18, 0.0 }
 0x20f   :  { %v218_v20 = vpack.c.bf16 %v217_v19, %v217_v19 }
 0x211   :  { %334 = vmatmul.mubr.msk.bf16.vlgmr.msra.gmra.mrb[4].mxu0 %vm46_vm1, %v218_v20 }
 0x2e4   :  { %v272_v22 = vpop.f32.mrb[4].mxu0 }
 0x2e5   :  { %v273_v23 = vadd.f32 %v300_v21, %v272_v22  ;;  %v335_v24 = vpop.f32.mrb[5].mxu0 }
 0x2e6   :  { %v275_v25 = vpop.f32.mrb[6].mxu0 }
 0x2e7   :  { %v336_v26 = vpop.f32.mrb[7].mxu0  ;;  %279 = vst.msk [vmem:[#allocation2] sm:$0xff] %vm278_vm2, %v273_v23 }
 0x2e8   :  { %361 = shalt.err (!%p358_p4)
}
 0x2e9   :  { %s362_s2 = scalar_lea.hbm %s464_s3, 128 }
 0x2ea   :  { %p363_p5 = scmp.ne.s32.totalorder %s464_s3, %s362_s2  ;;  %p366_p6 = scmp.lt.u32.totalorder %s362_s2, %s464_s3 }
 0x2ec   :  { %p368_p7 = pnand %p366_p6, %p363_p5 }
 0x2ee   :  { %371 = shalt.err (!%p368_p7)
}
 0x2ef   :  { %289 = dma.vmem_to_hbm [thread:$0]  %s287_s8, 128, %s464_s3, [#allocation3]  }
 0x2f0   :  { %372 = dma.done.wait [#allocation3], 128  }
 0x2f1   :  { %373 = vsyncadd [#allocation3], 4294967168 }
 0x2f2   :  { %293 = vsyncpa [#allocation3], 1 }

</bundles_post_ra>
